<compile_context>
chip_gen: v6e
topology: v6e:2x2x1
jax: 0.10.0
libtpu: 0.0.40
codegen_flags: <defaults>
</compile_context>

<pallas_src>
import functools

import jax
import jax.numpy as jnp
from jax.experimental import pallas as pl
from jax.experimental.pallas import tpu as pltpu


LANES = 128      # vreg lane width: last dim of every block
SUBLANES = 8     # vreg sublane count: block rows kept a multiple of this
_VMEM_HEADROOM = 8 * 1024 * 1024   # slack for semaphores / compiler scratch
_PALLAS_MIN_ELEMS = 1024           # below this, plain XLA beats kernel launch cost


# --------------------------- sizing helpers ---------------------------------


def _round_up(x, m):
    return (x + m - 1) // m * m


def _vmem_limit_bytes():
    """~3/4 of physical VMEM: 96 MiB on v5e/v6e (128 MiB), 48 MiB on v7x (64 MiB)."""
    cap = 64 * 1024 * 1024  # conservative default (v7x physical)
    try:
        cap = int(getattr(pltpu.get_tpu_info(), "vmem_capacity_bytes", cap))
    except Exception:  # not on TPU at trace time, or API mismatch
        pass
    return (cap * 3) // 4


def _choose_block_rows(itemsizes):
    """Largest row-block such that every double-buffered stream fits the budget."""
    budget = max(_vmem_limit_bytes() - _VMEM_HEADROOM, 4 * 1024 * 1024)
    bytes_per_row = LANES * sum(itemsizes)   # one lane-dense row across all streams
    rows = budget // (2 * bytes_per_row)     # 2 = pipeline double buffering
    return max(SUBLANES, (rows // SUBLANES) * SUBLANES)


def _to_lane_dense(arr, padded_rows):
    """Flatten to 1-D, zero-pad, reshape to a lane-dense (rows, 128) slab."""
    flat = arr.reshape(-1)
    pad = padded_rows * LANES - flat.shape[0]
    if pad:
        flat = jnp.pad(flat, (0, pad))
    return flat.reshape(padded_rows, LANES)


# ----------------------------- kernels ---------------------------------------


def _sum_kernel(pred_ref, label_ref, out_ref):
    """Accumulate squared error into a VMEM-resident (8,128) block (pure VPU)."""
    j = pl.program_id(1)

    @pl.when(j == 0)
    def _():
        out_ref[...] = jnp.zeros_like(out_ref)

    d = pred_ref[...].astype(jnp.float32) - label_ref[...].astype(jnp.float32)
    sq = d * d
    # Fold the (block_rows, 128) tile into one (8, 128) vreg: elementwise adds
    # across vregs only — no cross-lane XLU reduce, no scalar RMW, per step.
    out_ref[...] += jnp.sum(sq.reshape(-1, SUBLANES, LANES), axis=0)


def _sum_weighted_kernel(pred_ref, label_ref, w_ref, out_ref):
    j = pl.program_id(1)

    @pl.when(j == 0)
    def _():
        out_ref[...] = jnp.zeros_like(out_ref)

    d = pred_ref[...].astype(jnp.float32) - label_ref[...].astype(jnp.float32)
    sq = d * d * w_ref[...].astype(jnp.float32)
    out_ref[...] += jnp.sum(sq.reshape(-1, SUBLANES, LANES), axis=0)


def _none_kernel(pred_ref, label_ref, out_ref, *, scale):
    d = pred_ref[...].astype(jnp.float32) - label_ref[...].astype(jnp.float32)
    sq = d * d
    if scale != 1.0:           # loss_weight folded in: no second full-tensor pass
        sq = sq * scale
    out_ref[...] = sq.astype(out_ref.dtype)


def _none_weighted_kernel(pred_ref, label_ref, w_ref, out_ref, *, scale):
    d = pred_ref[...].astype(jnp.float32) - label_ref[...].astype(jnp.float32)
    sq = d * d * w_ref[...].astype(jnp.float32)
    if scale != 1.0:
        sq = sq * scale
    out_ref[...] = sq.astype(out_ref.dtype)


# ----------------------------- wrappers ---------------------------------------


def _pallas_mse_sum(pred, label, weight):
    """Returns sum((pred-label)^2 [* weight]) as an f32 scalar."""
    t = pred.size
    arrs = [pred, label] if weight is None else [pred, label, weight]

    rows = pl.cdiv(t, LANES)
    block_rows = min(_choose_block_rows([a.dtype.itemsize for a in arrs]),
                     _round_up(rows, SUBLANES))
    g = pl.cdiv(rows, block_rows)

    # v7x has 2 TensorCores: split the reduction into 2 independent partials
    # (leading "parallel" axis) when the extra zero-padding is zero/small.
    # Harmless (just a serial loop) on single-core v5e/v6e.
    num_partials = 2 if (g >= 2 and (g % 2 == 0 or g >= 8)) else 1
    if g % num_partials:
        g += num_partials - (g % num_partials)
    steps = g // num_partials
    padded_rows = g * block_rows

    tiles = [_to_lane_dense(a, padded_rows) for a in arrs]

    in_spec = pl.BlockSpec((block_rows, LANES), lambda c, j: (c * steps + j, 0))
    # One (8,128) accumulator block per partial, resident across the j axis.
    out_spec = pl.BlockSpec((SUBLANES, LANES), lambda c, j: (c, 0))
    kernel = _sum_kernel if weight is None else _sum_weighted_kernel

    partials = pl.pallas_call(
        kernel,
        out_shape=jax.ShapeDtypeStruct((num_partials * SUBLANES, LANES), jnp.float32),
        grid_spec=pltpu.PrefetchScalarGridSpec(
            num_scalar_prefetch=0,
            grid=(num_partials, steps),
            in_specs=[in_spec] * len(tiles),
            out_specs=out_spec,
        ),
        compiler_params=pltpu.CompilerParams(
            dimension_semantics=("parallel", "arbitrary"),
            vmem_limit_bytes=_vmem_limit_bytes(),
        ),
    )(*tiles)

    # Single tiny cross-lane reduce on <= (16, 128) f32 -- negligible XLA work.
    return jnp.sum(partials)


def _pallas_mse_none(pred, label, weight, scale):
    """Returns elementwise scale * (pred-label)^2 [* weight], shaped like pred."""
    t = pred.size
    orig_shape = pred.shape
    out_dtype = (pred.dtype if weight is None
                 else jnp.promote_types(pred.dtype, jnp.float32))
    arrs = [pred, label] if weight is None else [pred, label, weight]

    itemsizes = [a.dtype.itemsize for a in arrs] + [jnp.dtype(out_dtype).itemsize]
    rows = pl.cdiv(t, LANES)
    block_rows = min(_choose_block_rows(itemsizes), _round_up(rows, SUBLANES))
    g = pl.cdiv(rows, block_rows)
    padded_rows = g * block_rows

    tiles = [_to_lane_dense(a, padded_rows) for a in arrs]
    spec = pl.BlockSpec((block_rows, LANES), lambda i: (i, 0))
    kernel = functools.partial(
        _none_kernel if weight is None else _none_weighted_kernel,
        scale=float(scale))

    out = pl.pallas_call(
        kernel,
        out_shape=jax.ShapeDtypeStruct((padded_rows, LANES), out_dtype),
        grid_spec=pltpu.PrefetchScalarGridSpec(
            num_scalar_prefetch=0,
            grid=(g,),
            in_specs=[spec] * len(tiles),
            out_specs=spec,
        ),
        compiler_params=pltpu.CompilerParams(
            dimension_semantics=("parallel",),
            vmem_limit_bytes=_vmem_limit_bytes(),
        ),
    )(*tiles)

    flat = out.reshape(-1)
    if flat.shape[0] != t:
        flat = flat[:t]
    return flat.reshape(orig_shape)


def _jnp_reference(pred, label, weight, reduction, avg_factor, scale):
    """Small-problem fast path: everything fits in a vreg or two; let XLA fuse it."""
    loss = (pred.astype(jnp.float32) - label.astype(jnp.float32)) ** 2
    if weight is not None:
        loss = loss * weight.astype(jnp.float32)
    if reduction == 'none':
        out_dtype = (pred.dtype if weight is None
                     else jnp.promote_types(pred.dtype, jnp.float32))
        return (loss * scale).astype(out_dtype)
    total = jnp.sum(loss)
    if reduction == 'mean':
        div = pred.size if avg_factor is None else avg_factor
        total = total / div
    return total * scale


def mean_squared_error(pred, label, weight=None, reduction='mean',
                       avg_factor=None, _scale=1.0):
    """JAX/Pallas equivalent of the mmcv mean_squared_error().

    `_scale` is the module's loss_weight, folded into the kernel / scalar
    epilogue so no extra full-tensor pass is emitted.
    """
    assert reduction in ('none', 'mean', 'sum')
    assert pred.shape == label.shape
    if weight is not None:
        assert weight.shape == pred.shape
        # NOTE: no wrapper-side .astype(float32) -- weight streams in its native
        # dtype (half the HBM bytes for bf16) and is cast inside the kernel.

    if pred.size < _PALLAS_MIN_ELEMS:
        return _jnp_reference(pred, label, weight, reduction, avg_factor, _scale)

    if reduction == 'none':
        assert avg_factor is None, "avg_factor not allowed with reduction='none'"
        return _pallas_mse_none(pred, label, weight, _scale)

    total = _pallas_mse_sum(pred, label, weight)   # f32 scalar

    # For sum/mean the remaining work is a single scalar multiply/divide.
    if reduction == 'sum':
        assert avg_factor is None, "avg_factor not allowed with reduction='sum'"
        return total * _scale
    # reduction == 'mean'
    if avg_factor is None:
        return total * (_scale / float(pred.size))
    if isinstance(avg_factor, (int, float)):
        return total * (_scale / float(avg_factor))
    return total * _scale / avg_factor   # traced avg_factor: scalar divide


class MSELoss:
    """MSELoss module (forward-only), Pallas-backed."""

    def __init__(self, reduction='mean', loss_weight=1.0):
        self.reduction = reduction
        self.loss_weight = loss_weight
        self.criterion = mean_squared_error

    def __call__(self, cls_score, label, weight=None, avg_factor=None,
                 reduction_override=None):
        assert reduction_override in (None, 'none', 'mean', 'sum')
        reduction = reduction_override if reduction_override else self.reduction
        # loss_weight is folded into the kernel epilogue (no extra tensor pass).
        return self.criterion(cls_score, label, weight, reduction=reduction,
                              avg_factor=avg_factor, _scale=self.loss_weight)


# ------------------------------- main -----------------------------------------

if __name__ == "__main__":
    key = jax.random.PRNGKey(0)
    k1, k2, k3 = jax.random.split(key, 3)

    # Big enough to take the Pallas path, still small. N*C = 6144 -> 48 lane rows.
    N, C = 64, 96
    pred = jax.random.normal(k1, (N, C), dtype=jnp.float32)
    label = jax.random.normal(k2, (N, C), dtype=jnp.float32)
    weight = jax.random.uniform(k3, (N, C), dtype=jnp.float32)

    loss_mod = MSELoss(reduction='mean', loss_weight=1.0)

    # mean reduction
    loss_mean = loss_mod(pred, label)
    jax.block_until_ready(loss_mean)
    ref_mean = jnp.mean((pred - label) ** 2)
    assert jnp.allclose(loss_mean, ref_mean, rtol=1e-5, atol=1e-6)

    # sum reduction with weight
    loss_sum = loss_mod(pred, label, weight=weight, reduction_override='sum')
    jax.block_until_ready(loss_sum)
    ref_sum = jnp.sum((pred - label) ** 2 * weight)
    assert jnp.allclose(loss_sum, ref_sum, rtol=1e-5, atol=1e-4)

    # none reduction
    loss_none = loss_mod(pred, label, reduction_override='none')
    jax.block_until_ready(loss_none)
    ref_none = (pred - label) ** 2
    assert loss_none.shape == (N, C)
    assert jnp.allclose(loss_none, ref_none, rtol=1e-5, atol=1e-6)

    # mean with avg_factor
    loss_af = loss_mod(pred, label, weight=weight, avg_factor=100.0)
    jax.block_until_ready(loss_af)
    ref_af = jnp.sum((pred - label) ** 2 * weight) / 100.0
    assert jnp.allclose(loss_af, ref_af, rtol=1e-5, atol=1e-6)

    # loss_weight folded into the kernel
    loss_mod_lw = MSELoss(reduction='mean', loss_weight=0.5)
    loss_lw = loss_mod_lw(pred, label)
    jax.block_until_ready(loss_lw)
    assert jnp.allclose(loss_lw, 0.5 * ref_mean, rtol=1e-5, atol=1e-6)

    # awkward shape that exercises the zero-padding path (N*C not % 128)
    Np, Cp = 37, 100
    k4, k5, k6 = jax.random.split(k3, 3)
    pred_p = jax.random.normal(k4, (Np, Cp), dtype=jnp.float32)
    label_p = jax.random.normal(k5, (Np, Cp), dtype=jnp.float32)
    weight_p = jax.random.uniform(k6, (Np, Cp), dtype=jnp.float32)

    loss_p_sum = loss_mod(pred_p, label_p, weight=weight_p, reduction_override='sum')
    jax.block_until_ready(loss_p_sum)
    ref_p_sum = jnp.sum((pred_p - label_p) ** 2 * weight_p)
    assert jnp.allclose(loss_p_sum, ref_p_sum, rtol=1e-5, atol=1e-4)

    loss_p_none = loss_mod(pred_p, label_p, reduction_override='none')
    jax.block_until_ready(loss_p_none)
    assert loss_p_none.shape == (Np, Cp)
    assert jnp.allclose(loss_p_none, (pred_p - label_p) ** 2, rtol=1e-5, atol=1e-6)

    # tiny problem -> jnp fast path (Pallas launch overhead would dominate)
    small_pred = jax.random.normal(k1, (8, 32), dtype=jnp.float32)
    small_label = jax.random.normal(k2, (8, 32), dtype=jnp.float32)
    loss_small = loss_mod(small_pred, small_label)
    jax.block_until_ready(loss_small)
    assert jnp.allclose(loss_small, jnp.mean((small_pred - small_label) ** 2),
                        rtol=1e-5, atol=1e-6)

    print("KERNEL_OK")
</pallas_src>

<mosaic_0001>
module attributes {stable_mosaic.version = 11 : i64} {
  func.func @_sum_kernel(%arg0: i32, %arg1: i32, %arg2: memref<48x128xf32, #tpu.memory_space<vmem>>, %arg3: memref<48x128xf32, #tpu.memory_space<vmem>>, %arg4: memref<8x128xf32, #tpu.memory_space<vmem>>) attributes {dimension_semantics = [#tpu.dimension_semantics<parallel>, #tpu.dimension_semantics<arbitrary>], iteration_bounds = array<i64: 1, 1>, scalar_prefetch = 0 : i64, scratch_operands = 0 : i64, tpu.core_type = #tpu.core_type<tc>, window_params = [{transform_indices = @transform_0, window_bounds = array<i64: 48, 128>}, {transform_indices = @transform_1, window_bounds = array<i64: 48, 128>}, {transform_indices = @transform_2, window_bounds = array<i64: 8, 128>}]} {
    %c0_i32 = arith.constant 0 : i32
    %0 = arith.cmpi eq, %arg1, %c0_i32 : i32
    %1 = arith.extui %0 : i1 to i32
    %c0_i32_0 = arith.constant 0 : i32
    %2 = arith.cmpi ne, %1, %c0_i32_0 : i32
    scf.if %2 {
      %cst_8 = arith.constant 0.000000e+00 : f32
      %12 = vector.broadcast %cst_8 : f32 to vector<8x128xf32>
      %c0_9 = arith.constant 0 : index
      %c0_10 = arith.constant 0 : index
      %13 = vector.load %arg4[%c0_9, %c0_10] : memref<8x128xf32, #tpu.memory_space<vmem>>, vector<8x128xf32>
      tpu.vector_store %arg4[%c0_9, %c0_10], %12 {strides = array<i32>} : memref<8x128xf32, #tpu.memory_space<vmem>>, vector<8x128xf32>,
    } else {
    }
    %c0 = arith.constant 0 : index
    %c0_1 = arith.constant 0 : index
    %3 = vector.load %arg2[%c0, %c0_1] : memref<48x128xf32, #tpu.memory_space<vmem>>, vector<48x128xf32>
    %c0_2 = arith.constant 0 : index
    %c0_3 = arith.constant 0 : index
    %4 = vector.load %arg3[%c0_2, %c0_3] : memref<48x128xf32, #tpu.memory_space<vmem>>, vector<48x128xf32>
    %5 = arith.subf %3, %4 : vector<48x128xf32>
    %6 = arith.mulf %5, %5 : vector<48x128xf32>
    %c0_4 = arith.constant 0 : index
    %c0_5 = arith.constant 0 : index
    %7 = vector.load %arg4[%c0_4, %c0_5] : memref<8x128xf32, #tpu.memory_space<vmem>>, vector<8x128xf32>
    %8 = vector.shape_cast %6 : vector<48x128xf32> to vector<6x8x128xf32>
    %cst = arith.constant dense<0.000000e+00> : vector<8x128xf32>
    %9 = vector.multi_reduction <add>, %8, %cst [0] : vector<6x8x128xf32> to vector<8x128xf32>
    %10 = arith.addf %7, %9 : vector<8x128xf32>
    %c0_6 = arith.constant 0 : index
    %c0_7 = arith.constant 0 : index
    %11 = vector.load %arg4[%c0_6, %c0_7] : memref<8x128xf32, #tpu.memory_space<vmem>>, vector<8x128xf32>
    tpu.vector_store %arg4[%c0_6, %c0_7], %10 {strides = array<i32>} : memref<8x128xf32, #tpu.memory_space<vmem>>, vector<8x128xf32>,
    return
  }
  func.func @transform_0(%arg0: i32, %arg1: i32) -> (i32, i32) {
    %c1_i32 = arith.constant 1 : i32
    %0 = arith.muli %arg0, %c1_i32 : i32
    %1 = arith.addi %0, %arg1 : i32
    %c0_i32 = arith.constant 0 : i32
    %c0_i32_0 = arith.constant 0 : i32
    return %1, %c0_i32 : i32, i32
  }
  func.func @transform_1(%arg0: i32, %arg1: i32) -> (i32, i32) {
    %c1_i32 = arith.constant 1 : i32
    %0 = arith.muli %arg0, %c1_i32 : i32
    %1 = arith.addi %0, %arg1 : i32
    %c0_i32 = arith.constant 0 : i32
    %c0_i32_0 = arith.constant 0 : i32
    return %1, %c0_i32 : i32, i32
  }
  func.func @transform_2(%arg0: i32, %arg1: i32) -> (i32, i32) {
    %c0_i32 = arith.constant 0 : i32
    %c0_i32_0 = arith.constant 0 : i32
    return %arg0, %c0_i32 : i32, i32
  }
}

</mosaic_0001>

<bundles_post_ra>
// kernel: tpu_custom_call.1
= control target key start
LH: loop header
LB: loop body
LE: loop exit
PB: predicated region body
PF: predicated region fallthrough
CT: control target
= control target key end

     0   :  { %7 = vsyncpa [#allocation3], 0  ;;  %s206_s0 = inlined_call_operand.hbm [shape: f32[48,128], index: 0, kind: input, shape index: {}]   ;;  %s207_s1 = inlined_call_operand.hbm [shape: f32[48,128], index: 1, kind: input, shape index: {}]   ;;  %s208_s2 = inlined_call_operand.hbm [shape: f32[8,128], index: 2, kind: output, shape index: {}]  }
   0x1   :  { %8 = vsyncpa [#allocation6], 0 }
   0x2   :  { %9 = vsyncpa [#allocation4], 0  ;;  %s177_s9 = smov [#allocation2]  }
   0x3   :  { %s19_s10 = sshll.u32 %s177_s9, 4  ;;  %s20_s10 = int_to_ptr.vmem [resolvable:$true] %s19_s10 }
   0x4   :  { %s119_s11 = scalar_lea.vmem %s20_s10, 768  ;;  %p124_p1 = scmp.lt.s32.totalorder %s20_s10, %s20_s10 }
   0x5   :  { %p120_p0 = scmp.ne.s32.totalorder %s20_s10, %s119_s11  ;;  %p125_p2 = scmp.lt.s32.totalorder %s119_s11, %s119_s11 }
   0x7   :  { %p126_p3 = por %p125_p2, %p124_p1 }
   0x9   :  { %p127_p4 = pnand %p126_p3, %p120_p0 }
   0xb   :  { %130 = shalt.err (!%p127_p4)
}
   0xc   :  { %s178_s12 = smov 128   ;;  %s179_s13 = smov 8  }
   0xd   :  { %25 = dma.hbm_to_vmem [thread:$0]  %s206_s0, 768, %s20_s10, [#allocation3], %s178_s12, %s178_s12, %s179_s13  }
   0xe   :  { %s180_s16 = smov [#allocation5]  }
   0xf   :  { %s35_s17 = sshll.u32 %s180_s16, 4  ;;  %s36_s17 = int_to_ptr.vmem [resolvable:$true] %s35_s17 }
  0x10   :  { %s139_s18 = scalar_lea.vmem %s36_s17, 768  ;;  %p144_p6 = scmp.lt.s32.totalorder %s36_s17, %s36_s17 }
  0x11   :  { %p140_p5 = scmp.ne.s32.totalorder %s36_s17, %s139_s18  ;;  %p145_p7 = scmp.lt.s32.totalorder %s139_s18, %s139_s18 }
  0x13   :  { %p146_p8 = por %p145_p7, %p144_p6 }
  0x15   :  { %p147_p9 = pnand %p146_p8, %p140_p5 }
  0x17   :  { %150 = shalt.err (!%p147_p9)
}
  0x18   :  { %41 = dma.hbm_to_vmem [thread:$0]  %s207_s1, 768, %s36_s17, [#allocation6], %s178_s12, %s178_s12, %s179_s13  }
  0x19   :  { %171 = dma.done.wait [#allocation3], 768  }
  0x1a   :  { %172 = vsyncadd [#allocation3], 4294966528 }
  0x1b   :  { %173 = dma.done.wait [#allocation6], 768  }
  0x1c   :  { %174 = vsyncadd [#allocation6], 4294966528  ;;  %v57_v0 = vld [vmem:[#allocation2] sm:$0xff]  ;;  %v58_v1 = vld [vmem:[#allocation2 + $0x8] sm:$0xff]  ;;  %s181_s0 = smov [#allocation7]  }
  0x1d   :  { %v59_v2 = vld [vmem:[#allocation2 + $0x10] sm:$0xff]  ;;  %v60_v3 = vld [vmem:[#allocation2 + $0x18] sm:$0xff]  ;;  %v61_v4 = vld [vmem:[#allocation2 + $0x20] sm:$0xff]  ;;  %s95_s1 = sshll.u32 %s181_s0, 4  ;;  %s96_s1 = int_to_ptr.vmem [resolvable:$true] %s95_s1 }
  0x1e   :  { %v63_v5 = vld [vmem:[#allocation5] sm:$0xff]  ;;  %v64_v6 = vld [vmem:[#allocation5 + $0x8] sm:$0xff]  ;;  %v65_v7 = vld [vmem:[#allocation5 + $0x10] sm:$0xff]  ;;  %s151_s21 = scalar_lea.vmem %s96_s1, 128  ;;  %p156_p11 = scmp.lt.s32.totalorder %s96_s1, %s96_s1 }
  0x1f   :  { %v66_v8 = vld [vmem:[#allocation5 + $0x18] sm:$0xff]  ;;  %v67_v9 = vld [vmem:[#allocation5 + $0x20] sm:$0xff]  ;;  %v69_v10 = vsub.f32 %v57_v0, %v63_v5  ;;  %v70_v11 = vsub.f32 %v58_v1, %v64_v6  ;;  %v71_v12 = vsub.f32 %v59_v2, %v65_v7  ;;  %v68_v14 = vld [vmem:[#allocation5 + $0x28] sm:$0xff]  ;;  %p152_p10 = scmp.ne.s32.totalorder %s96_s1, %s151_s21  ;;  %p157_p12 = scmp.lt.s32.totalorder %s151_s21, %s151_s21 }
  0x20   :  { %v62_v13 = vld [vmem:[#allocation2 + $0x28] sm:$0xff]  ;;  %v72_v15 = vsub.f32 %v60_v3, %v66_v8  ;;  %v73_v16 = vsub.f32 %v61_v4, %v67_v9 }
  0x21   :  { %v75_v17 = vmul.f32 %v69_v10, %v69_v10  ;;  %v76_v18 = vmul.f32 %v70_v11, %v70_v11  ;;  %v77_v19 = vmul.f32 %v71_v12, %v71_v12  ;;  %v74_v20 = vsub.f32 %v62_v13, %v68_v14  ;;  %p158_p13 = por %p157_p12, %p156_p11 }
  0x22   :  { %v78_v21 = vmul.f32 %v72_v15, %v72_v15  ;;  %v79_v23 = vmul.f32 %v73_v16, %v73_v16 }
  0x23   :  { %v82_v22 = vadd.f32 %v76_v18, %v75_v17  ;;  %v80_v25 = vmul.f32 %v74_v20, %v74_v20  ;;  %p159_p0 = pnand %p158_p13, %p152_p10 }
  0x25   :  { %v83_v24 = vadd.f32 %v82_v22, %v77_v19 }
  0x27   :  { %v84_v26 = vadd.f32 %v83_v24, %v78_v21 }
  0x29   :  { %v85_v27 = vadd.f32 %v84_v26, %v79_v23 }
  0x2b   :  { %v86_v28 = vadd.f32 %v85_v27, %v80_v25 }
  0x2d   :  { %88 = vst [vmem:[#allocation7] sm:$0xff] %v86_v28 }
  0x2e   :  { %162 = shalt.err (!%p159_p0)
}
  0x2f   :  { %98 = dma.vmem_to_hbm [thread:$0]  %s96_s1, 128, %s208_s2, [#allocation4]  }
  0x30   :  { %175 = dma.done.wait [#allocation4], 128  }
  0x31   :  { %176 = vsyncadd [#allocation4], 4294967168 }
  0x32   :  { %102 = vsyncpa [#allocation3], 1 }
  0x33   :  { %103 = vsyncpa [#allocation6], 1 }
  0x34   :  { %104 = vsyncpa [#allocation4], 1 }

</bundles_post_ra>
